<compile_context>
chip_gen: v6e
topology: v6e:2x2x1
jax: 0.10.0
libtpu: 0.0.40
codegen_flags: <defaults>
</compile_context>

<pallas_src>
import functools

import jax
import jax.numpy as jnp
from jax import lax
from jax.experimental import pallas as pl
from jax.experimental.pallas import tpu as pltpu

# ---------------- model hyper-parameters (small, static) --------------------
D = 4          # input feature dim
DD = 2         # output feature dim
WIDTH = 32     # hidden width
DEPTH = 3      # number of residual blocks
N = 256        # batch size

LANE = 128     # TPU lane width


def _round_up(x, m):
    return (x + m - 1) // m * m


def _resnet_kernel(depth, compute_dtype,
                   xT_ref, win_ref, bin_ref, wstk_ref, bstk_ref, wout_ref,
                   oT_ref):
    """Fused forward, feature-major: activations live as [WIDTH, tile_n]."""
    # linearIn + activation:  h^T = tanh(W_in @ x^T + b_in)
    h = jnp.tanh(
        jnp.dot(win_ref[...], xT_ref[...],
                preferred_element_type=jnp.float32)
        + bin_ref[...])                                   # [WIDTH,1] lane bcast

    # residual blocks: h^T = h^T + tanh(W_l @ h^T + b_l)
    def body(i, h):
        w = wstk_ref[i]                                   # [WIDTH, WIDTH]
        b = bstk_ref[i]                                   # [WIDTH, 1]
        return h + jnp.tanh(
            jnp.dot(w, h.astype(compute_dtype),
                    preferred_element_type=jnp.float32) + b)

    h = lax.fori_loop(0, depth, body, h, unroll=True)

    # linearOut (no bias): o^T = W_out @ h^T  -> lane-dense [DD, tile_n] store
    oT_ref[...] = jnp.dot(wout_ref[...], h.astype(compute_dtype),
                          preferred_element_type=jnp.float32
                          ).astype(oT_ref.dtype)


def resnet_forward(x, w_in, b_in, w_stack, b_stack, w_out, *,
                   tile_n=None, compute_dtype=jnp.float32):
    """x: [N, D]; weights torch-native ([out, in]); biases [out]."""
    n, d = x.shape
    width = w_in.shape[0]
    dd = w_out.shape[0]
    depth = w_stack.shape[0]

    # ---- batch tiling on the lane axis: one step for small batches,
    #      512-wide lane tiles (good HBM-roofline fraction) for large ones.
    if tile_n is None:
        tile_n = n if n <= 512 else 512
    tile_n = _round_up(min(tile_n, n), LANE)
    n_pad = _round_up(n, tile_n)
    n_steps = n_pad // tile_n

    # ---- feature-major operands (batch on lanes), lane-padded batch.
    xT = jnp.zeros((d, n_pad), compute_dtype).at[:, :n].set(
        x.T.astype(compute_dtype))
    w_in_c = w_in.astype(compute_dtype)
    w_stack_c = w_stack.astype(compute_dtype)
    w_out_c = w_out.astype(compute_dtype)
    b_in_c = b_in.reshape(width, 1).astype(jnp.float32)
    b_stack_c = b_stack.reshape(depth, width, 1).astype(jnp.float32)

    kernel = functools.partial(_resnet_kernel, depth, compute_dtype)

    flops = 2 * n_pad * (d * width + depth * width * width + width * dd)
    transcendentals = n_pad * width * (depth + 1)
    bytes_accessed = 4 * (xT.size + w_in.size + b_in.size + w_stack.size
                          + b_stack.size + w_out.size + dd * n_pad)

    out_t = pl.pallas_call(
        kernel,
        out_shape=jax.ShapeDtypeStruct((dd, n_pad), jnp.float32),
        grid_spec=pl.GridSpec(
            grid=(n_steps,),
            in_specs=[
                # batch tile (lane axis) marches with the grid...
                pl.BlockSpec((d, tile_n), lambda i: (0, i)),
                # ...all weights/biases stay resident in VMEM across steps.
                pl.BlockSpec((width, d), lambda i: (0, 0)),
                pl.BlockSpec((width, 1), lambda i: (0, 0)),
                pl.BlockSpec((depth, width, width), lambda i: (0, 0, 0)),
                pl.BlockSpec((depth, width, 1), lambda i: (0, 0, 0)),
                pl.BlockSpec((dd, width), lambda i: (0, 0)),
            ],
            out_specs=pl.BlockSpec((dd, tile_n), lambda i: (0, i)),
        ),
        compiler_params=pltpu.CompilerParams(
            dimension_semantics=(
                ("parallel",) if n_steps > 1 else ("arbitrary",))),
        cost_estimate=pl.CostEstimate(flops=flops,
                                      transcendentals=transcendentals,
                                      bytes_accessed=bytes_accessed),
    )(xT, w_in_c, b_in_c, w_stack_c, b_stack_c, w_out_c)

    # tiny [DD, n] -> [n, DD] un-pad + transpose in the wrapper
    return out_t[:, :n].T


def resnet_reference(x, w_in, b_in, w_stack, b_stack, w_out):
    """Pure-JAX reference mirroring the PyTorch forward (torch weight layout)."""
    h = jnp.tanh(x @ w_in.T + b_in)
    for i in range(w_stack.shape[0]):
        h = h + jnp.tanh(h @ w_stack[i].T + b_stack[i])
    return h @ w_out.T


if __name__ == "__main__":
    key = jax.random.PRNGKey(0)
    kx, kwi, kbi, kws, kbs, kwo = jax.random.split(key, 6)

    # Deterministic synthetic parameters, torch-native layouts.
    x = jax.random.normal(kx, (N, D), dtype=jnp.float32)
    w_in = jax.random.normal(kwi, (WIDTH, D), dtype=jnp.float32) * 0.3
    b_in = jax.random.normal(kbi, (WIDTH,), dtype=jnp.float32) * 0.1
    w_stack = jax.random.normal(kws, (DEPTH, WIDTH, WIDTH),
                                dtype=jnp.float32) * 0.1
    b_stack = jax.random.normal(kbs, (DEPTH, WIDTH),
                                dtype=jnp.float32) * 0.1
    w_out = jax.random.normal(kwo, (DD, WIDTH), dtype=jnp.float32) * 0.3

    ref = resnet_reference(x, w_in, b_in, w_stack, b_stack, w_out)

    # f32 path (exact module numerics; the right default on v5e).
    out = resnet_forward(x, w_in, b_in, w_stack, b_stack, w_out)
    out = jax.block_until_ready(out)
    assert out.shape == (N, DD)
    assert jnp.allclose(out, ref, atol=1e-4, rtol=1e-4), "f32 mismatch vs ref"

    # bf16-operand / f32-accumulate path (recommended on v6e / v7x MXUs).
    out_bf16 = resnet_forward(x, w_in, b_in, w_stack, b_stack, w_out,
                              compute_dtype=jnp.bfloat16)
    out_bf16 = jax.block_until_ready(out_bf16)
    assert out_bf16.shape == (N, DD)
    assert jnp.allclose(out_bf16, ref, atol=1e-1, rtol=1e-1), "bf16 mismatch"

    # TODO(synk): nn.Dropout path (use_dropout=True) omitted; forward matches
    # eval-mode / dropout=False semantics.
    print("KERNEL_OK")
</pallas_src>

<mosaic_0001>
module attributes {stable_mosaic.version = 11 : i64} {
  func.func @_resnet_kernel(%arg0: i32, %arg1: memref<4x256xf32, #tpu.memory_space<vmem>>, %arg2: memref<32x4xf32, #tpu.memory_space<vmem>>, %arg3: memref<32x1xf32, #tpu.memory_space<vmem>>, %arg4: memref<3x32x32xf32, #tpu.memory_space<vmem>>, %arg5: memref<3x32x1xf32, #tpu.memory_space<vmem>>, %arg6: memref<2x32xf32, #tpu.memory_space<vmem>>, %arg7: memref<2x256xf32, #tpu.memory_space<vmem>>) attributes {dimension_semantics = [#tpu.dimension_semantics<arbitrary>], iteration_bounds = array<i64: 1>, scalar_prefetch = 0 : i64, scratch_operands = 0 : i64, tpu.core_type = #tpu.core_type<tc>, window_params = [{transform_indices = @transform_0, window_bounds = array<i64: 4, 256>}, {pipeline_mode = #tpu.pipeline_mode<synchronous>, transform_indices = @transform_1, window_bounds = array<i64: 32, 4>}, {pipeline_mode = #tpu.pipeline_mode<synchronous>, transform_indices = @transform_2, window_bounds = array<i64: 32, 1>}, {pipeline_mode = #tpu.pipeline_mode<synchronous>, transform_indices = @transform_3, window_bounds = array<i64: 3, 32, 32>}, {pipeline_mode = #tpu.pipeline_mode<synchronous>, transform_indices = @transform_4, window_bounds = array<i64: 3, 32, 1>}, {pipeline_mode = #tpu.pipeline_mode<synchronous>, transform_indices = @transform_5, window_bounds = array<i64: 2, 32>}, {transform_indices = @transform_6, window_bounds = array<i64: 2, 256>}]} {
    %c0 = arith.constant 0 : index
    %c0_0 = arith.constant 0 : index
    %0 = vector.load %arg2[%c0, %c0_0] : memref<32x4xf32, #tpu.memory_space<vmem>>, vector<32x4xf32>
    %c0_1 = arith.constant 0 : index
    %c0_2 = arith.constant 0 : index
    %1 = vector.load %arg1[%c0_1, %c0_2] : memref<4x256xf32, #tpu.memory_space<vmem>>, vector<4x256xf32>
    %cst = arith.constant dense<0.000000e+00> : vector<32x256xf32>
    %2 = tpu.matmul %0, %1, %cst {dimension_numbers = #tpu.dot_dimension_numbers<[1], [0], [0], [1], [0, 0, 1, 1], [], []>} : vector<32x4xf32>, vector<4x256xf32>, vector<32x256xf32> -> vector<32x256xf32>
    %c0_3 = arith.constant 0 : index
    %c0_4 = arith.constant 0 : index
    %3 = vector.load %arg3[%c0_3, %c0_4] : memref<32x1xf32, #tpu.memory_space<vmem>>, vector<32x1xf32>
    %4 = vector.broadcast %3 : vector<32x1xf32> to vector<32x256xf32>
    %5 = arith.addf %2, %4 : vector<32x256xf32>
    %6 = math.tanh %5 : vector<32x256xf32>
    %c0_i32 = arith.constant 0 : i32
    %7 = arith.index_cast %c0_i32 : i32 to index
    %c0_5 = arith.constant 0 : index
    %c0_6 = arith.constant 0 : index
    %8 = vector.load %arg4[%7, %c0_5, %c0_6] : memref<3x32x32xf32, #tpu.memory_space<vmem>>, vector<1x32x32xf32>
    %9 = vector.shape_cast %8 : vector<1x32x32xf32> to vector<32x32xf32>
    %10 = arith.index_cast %c0_i32 : i32 to index
    %c0_7 = arith.constant 0 : index
    %c0_8 = arith.constant 0 : index
    %11 = vector.load %arg5[%10, %c0_7, %c0_8] : memref<3x32x1xf32, #tpu.memory_space<vmem>>, vector<1x32x1xf32>
    %12 = vector.shape_cast %11 : vector<1x32x1xf32> to vector<32x1xf32>
    %cst_9 = arith.constant dense<0.000000e+00> : vector<32x256xf32>
    %13 = tpu.matmul %9, %6, %cst_9 {dimension_numbers = #tpu.dot_dimension_numbers<[1], [0], [0], [1], [0, 0, 1, 1], [], []>} : vector<32x32xf32>, vector<32x256xf32>, vector<32x256xf32> -> vector<32x256xf32>
    %14 = vector.broadcast %12 : vector<32x1xf32> to vector<32x256xf32>
    %15 = arith.addf %13, %14 : vector<32x256xf32>
    %16 = math.tanh %15 : vector<32x256xf32>
    %17 = arith.addf %6, %16 : vector<32x256xf32>
    %c1_i32 = arith.constant 1 : i32
    %18 = arith.index_cast %c1_i32 : i32 to index
    %c0_10 = arith.constant 0 : index
    %c0_11 = arith.constant 0 : index
    %19 = vector.load %arg4[%18, %c0_10, %c0_11] : memref<3x32x32xf32, #tpu.memory_space<vmem>>, vector<1x32x32xf32>
    %20 = vector.shape_cast %19 : vector<1x32x32xf32> to vector<32x32xf32>
    %21 = arith.index_cast %c1_i32 : i32 to index
    %c0_12 = arith.constant 0 : index
    %c0_13 = arith.constant 0 : index
    %22 = vector.load %arg5[%21, %c0_12, %c0_13] : memref<3x32x1xf32, #tpu.memory_space<vmem>>, vector<1x32x1xf32>
    %23 = vector.shape_cast %22 : vector<1x32x1xf32> to vector<32x1xf32>
    %cst_14 = arith.constant dense<0.000000e+00> : vector<32x256xf32>
    %24 = tpu.matmul %20, %17, %cst_14 {dimension_numbers = #tpu.dot_dimension_numbers<[1], [0], [0], [1], [0, 0, 1, 1], [], []>} : vector<32x32xf32>, vector<32x256xf32>, vector<32x256xf32> -> vector<32x256xf32>
    %25 = vector.broadcast %23 : vector<32x1xf32> to vector<32x256xf32>
    %26 = arith.addf %24, %25 : vector<32x256xf32>
    %27 = math.tanh %26 : vector<32x256xf32>
    %28 = arith.addf %17, %27 : vector<32x256xf32>
    %c2_i32 = arith.constant 2 : i32
    %29 = arith.index_cast %c2_i32 : i32 to index
    %c0_15 = arith.constant 0 : index
    %c0_16 = arith.constant 0 : index
    %30 = vector.load %arg4[%29, %c0_15, %c0_16] : memref<3x32x32xf32, #tpu.memory_space<vmem>>, vector<1x32x32xf32>
    %31 = vector.shape_cast %30 : vector<1x32x32xf32> to vector<32x32xf32>
    %32 = arith.index_cast %c2_i32 : i32 to index
    %c0_17 = arith.constant 0 : index
    %c0_18 = arith.constant 0 : index
    %33 = vector.load %arg5[%32, %c0_17, %c0_18] : memref<3x32x1xf32, #tpu.memory_space<vmem>>, vector<1x32x1xf32>
    %34 = vector.shape_cast %33 : vector<1x32x1xf32> to vector<32x1xf32>
    %cst_19 = arith.constant dense<0.000000e+00> : vector<32x256xf32>
    %35 = tpu.matmul %31, %28, %cst_19 {dimension_numbers = #tpu.dot_dimension_numbers<[1], [0], [0], [1], [0, 0, 1, 1], [], []>} : vector<32x32xf32>, vector<32x256xf32>, vector<32x256xf32> -> vector<32x256xf32>
    %36 = vector.broadcast %34 : vector<32x1xf32> to vector<32x256xf32>
    %37 = arith.addf %35, %36 : vector<32x256xf32>
    %38 = math.tanh %37 : vector<32x256xf32>
    %39 = arith.addf %28, %38 : vector<32x256xf32>
    %c3_i32 = arith.constant 3 : i32
    %c0_20 = arith.constant 0 : index
    %c0_21 = arith.constant 0 : index
    %40 = vector.load %arg6[%c0_20, %c0_21] : memref<2x32xf32, #tpu.memory_space<vmem>>, vector<2x32xf32>
    %cst_22 = arith.constant dense<0.000000e+00> : vector<2x256xf32>
    %41 = tpu.matmul %40, %39, %cst_22 {dimension_numbers = #tpu.dot_dimension_numbers<[1], [0], [0], [1], [0, 0, 1, 1], [], []>} : vector<2x32xf32>, vector<32x256xf32>, vector<2x256xf32> -> vector<2x256xf32>
    %c0_23 = arith.constant 0 : index
    %c0_24 = arith.constant 0 : index
    %42 = vector.load %arg7[%c0_23, %c0_24] : memref<2x256xf32, #tpu.memory_space<vmem>>, vector<2x256xf32>
    tpu.vector_store %arg7[%c0_23, %c0_24], %41 {strides = array<i32>} : memref<2x256xf32, #tpu.memory_space<vmem>>, vector<2x256xf32>,
    return
  }
  func.func @transform_0(%arg0: i32) -> (i32, i32) {
    %c0_i32 = arith.constant 0 : i32
    %c0_i32_0 = arith.constant 0 : i32
    return %c0_i32, %arg0 : i32, i32
  }
  func.func @transform_1(%arg0: i32) -> (i32, i32) {
    %c0_i32 = arith.constant 0 : i32
    %c0_i32_0 = arith.constant 0 : i32
    %c0_i32_1 = arith.constant 0 : i32
    return %c0_i32, %c0_i32_0 : i32, i32
  }
  func.func @transform_2(%arg0: i32) -> (i32, i32) {
    %c0_i32 = arith.constant 0 : i32
    %c0_i32_0 = arith.constant 0 : i32
    %c0_i32_1 = arith.constant 0 : i32
    return %c0_i32, %c0_i32_0 : i32, i32
  }
  func.func @transform_3(%arg0: i32) -> (i32, i32, i32) {
    %c0_i32 = arith.constant 0 : i32
    %c0_i32_0 = arith.constant 0 : i32
    %c0_i32_1 = arith.constant 0 : i32
    %c0_i32_2 = arith.constant 0 : i32
    return %c0_i32, %c0_i32_0, %c0_i32_1 : i32, i32, i32
  }
  func.func @transform_4(%arg0: i32) -> (i32, i32, i32) {
    %c0_i32 = arith.constant 0 : i32
    %c0_i32_0 = arith.constant 0 : i32
    %c0_i32_1 = arith.constant 0 : i32
    %c0_i32_2 = arith.constant 0 : i32
    return %c0_i32, %c0_i32_0, %c0_i32_1 : i32, i32, i32
  }
  func.func @transform_5(%arg0: i32) -> (i32, i32) {
    %c0_i32 = arith.constant 0 : i32
    %c0_i32_0 = arith.constant 0 : i32
    %c0_i32_1 = arith.constant 0 : i32
    return %c0_i32, %c0_i32_0 : i32, i32
  }
  func.func @transform_6(%arg0: i32) -> (i32, i32) {
    %c0_i32 = arith.constant 0 : i32
    %c0_i32_0 = arith.constant 0 : i32
    return %c0_i32, %arg0 : i32, i32
  }
}

</mosaic_0001>

<bundles_post_ra>
// kernel: tpu_custom_call.1
= control target key start
LH: loop header
LB: loop body
LE: loop exit
PB: predicated region body
PF: predicated region fallthrough
CT: control target
= control target key end

     0   :  { %vm68_vm0 = vcmask 1043456   ;;  %v839_v2 = vmov 0.0   ;;  %vm55_vm1 = vcmask 31744   ;;  %v840_v5 = vmov 0   ;;  %s1104_s0 = inlined_call_operand.vmem [shape: f32[4,256], index: 0, kind: input, shape index: {}]   ;;  %s1105_s1 = inlined_call_operand.vmem [shape: f32[32,4], index: 1, kind: input, shape index: {}]   ;;  %s1106_s2 = inlined_call_operand.vmem [shape: f32[32,1], index: 2, kind: input, shape index: {}]   ;;  %s1107_s3 = inlined_call_operand.vmem [shape: f32[3,32,32], index: 3, kind: input, shape index: {}]   ;;  %s1108_s4 = inlined_call_operand.vmem [shape: f32[3,32,1], index: 4, kind: input, shape index: {}]   ;;  %s1109_s5 = inlined_call_operand.vmem [shape: f32[2,32], index: 5, kind: input, shape index: {}]   ;;  %s1110_s6 = inlined_call_operand.hbm [shape: f32[2,256], index: 6, kind: output, shape index: {}]  }
   0x1   :  { %v28_v0 = vld [vmem:[%s1104_s0] sm:$0xff]  ;;  %137 = vmatprep.mubr.f32.mxu0 %v839_v2  ;;  %v32_v3 = vld [vmem:[%s1106_s2 + $0x18] sm:$0xff]  ;;  %275 = vmatprep.mubr.f32.mxu1 %v839_v2  ;;  %v30_v6 = vld [vmem:[%s1106_s2 + $0x8] sm:$0xff] }
   0x2   :  { %v54_v1 = vcombine.high %v28_v0, %v28_v0  ;;  %v24_v4 = vld [vmem:[%s1105_s1] sm:$0xff]  ;;  %750 = vset.pattern.permute.xlu0 %v840_v5  ;;  %751 = vset.pattern.permute.xlu1 %v840_v5  ;;  %v31_v7 = vld [vmem:[%s1106_s2 + $0x10] sm:$0xff]  ;;  %v25_v9 = vld [vmem:[%s1105_s1 + $0x8] sm:$0xff] }
   0x3   :  { %50 = vperm.xlu0 %750, %v32_v3   ;;  %40 = vperm.xlu1 %751, %v30_v6   ;;  %v29_v8 = vld [vmem:[%s1106_s2] sm:$0xff] }
   0x4   :  { %711 = vmatprep.subr.msk.mxu0 %vm68_vm0, %v54_v1 }
   0x5   :  { %712 = vmatpush1.msk.msra.mxu0 %vm68_vm0, %v28_v0 }
   0x6   :  { %713 = vmatmul.mubr.msk.f32.vlgmr.msra.gmra.mxu0 %vm55_vm1, %v24_v4 }
   0x7   :  { %143 = vmatprep.mubr.f32.mxu0 %v839_v2  ;;  %45 = vperm.xlu0 %750, %v31_v7  }
   0x8   :  { %11 = vsyncpa [#allocation3], 0  ;;  %v177_v10 = vld [vmem:[%s1108_s4 + $0x18] sm:$0xff]  ;;  %35 = vperm.xlu1 %751, %v29_v8   ;;  %v176_v11 = vld [vmem:[%s1108_s4 + $0x10] sm:$0xff]  ;;  %vm198_vm2 = vcmask 261120   ;;  %s841_s8 = smov [#allocation2]  }
   0x9   :  { %v26_v12 = vld [vmem:[%s1105_s1 + $0x10] sm:$0xff]  ;;  %v175_v13 = vld [vmem:[%s1108_s4 + $0x8] sm:$0xff]  ;;  %v174_v14 = vld [vmem:[%s1108_s4] sm:$0xff]  ;;  %s703_s9 = sshll.u32 %s841_s8, 4  ;;  %s704_s9 = int_to_ptr.vmem [resolvable:$true] %s703_s9 }
   0xa   :  { %714 = vmatmul.mubr.msk.f32.gmra.mxu0 %vm55_vm1, %v25_v9  ;;  %v27_v15 = vld [vmem:[%s1105_s1 + $0x18] sm:$0xff]  ;;  %v727_v17 = vld [vmem:[%s1108_s4 + $0x30] sm:$0xff]  ;;  %v726_v18 = vld [vmem:[%s1108_s4 + $0x28] sm:$0xff]  ;;  %s817_s10 = scalar_lea.vmem %s704_s9, 64  ;;  %p822_p1 = scmp.lt.s32.totalorder %s704_s9, %s704_s9 }
   0xb   :  { %149 = vmatprep.mubr.f32.mxu0 %v839_v2  ;;  %195 = vperm.xlu0 %750, %v177_v10   ;;  %v728_v16 = vld [vmem:[%s1108_s4 + $0x38] sm:$0xff]  ;;  %v725_v19 = vld [vmem:[%s1108_s4 + $0x20] sm:$0xff]  ;;  %v739_v21 = vld [vmem:[%s1108_s4 + $0x50] sm:$0xff]  ;;  %p818_p0 = scmp.ne.s32.totalorder %s704_s9, %s817_s10  ;;  %p823_p2 = scmp.lt.s32.totalorder %s817_s10, %s817_s10 }
   0xc   :  { %190 = vperm.xlu1 %751, %v176_v11   ;;  %v740_v20 = vld [vmem:[%s1108_s4 + $0x58] sm:$0xff]  ;;  %v738_v22 = vld [vmem:[%s1108_s4 + $0x48] sm:$0xff]  ;;  %v737_v23 = vld [vmem:[%s1108_s4 + $0x40] sm:$0xff] }
   0xd   :  { %v170_v51 = vld [vmem:[%s1107_s3] sm:$0xff]  ;;  %v171_v53 = vld [vmem:[%s1107_s3 + $0x8] sm:$0xff]  ;;  %v172_v54 = vld [vmem:[%s1107_s3 + $0x10] sm:$0xff]  ;;  %p824_p3 = por %p823_p2, %p822_p1 }
   0xe   :  { %715 = vmatmul.mubr.msk.f32.gmra.mxu0 %vm55_vm1, %v26_v12  ;;  %v173_v55 = vld [vmem:[%s1107_s3 + $0x18] sm:$0xff] }
   0xf   :  { %155 = vmatprep.mubr.f32.mxu0 %v839_v2  ;;  %185 = vperm.xlu0 %750, %v175_v13   ;;  %p825_p4 = pnand %p824_p3, %p818_p0 }
  0x10   :  { %180 = vperm.xlu1 %751, %v174_v14  }
  0x12   :  { %716 = vmatmul.mubr.msk.f32.gmra.mxu0 %vm55_vm1, %v27_v15 }
  0x13   :  { %422 = vmatprep.mubr.f32.mxu0 %v839_v2  ;;  %343 = vperm.xlu0 %750, %v728_v16  }
  0x14   :  { %338 = vperm.xlu1 %751, %v727_v17  }
  0x17   :  { %333 = vperm.xlu0 %750, %v726_v18  }
  0x18   :  { %328 = vperm.xlu1 %751, %v725_v19  }
  0x1b   :  { %490 = vperm.xlu0 %750, %v740_v20  }
  0x1c   :  { %485 = vperm.xlu1 %751, %v739_v21  }
  0x1f   :  { %480 = vperm.xlu0 %750, %v738_v22  }
  0x20   :  { %475 = vperm.xlu1 %751, %v737_v23  }
  0x7e   :  { %v51_v28 = vpop.permute.xlu0 %50  ;;  %v41_v31 = vpop.permute.xlu1 %40 }
  0x82   :  { %v46_v33 = vpop.permute.xlu0 %45 }
  0x83   :  { %v36_v40 = vpop.permute.xlu1 %35 }
  0x86   :  { %v196_v60 = vpop.permute.xlu0 %195 }
  0x87   :  { %v191_v62 = vpop.permute.xlu1 %190 }
  0x8a   :  { %v186_v4 = vpop.permute.xlu0 %185 }
  0x8b   :  { %v181_v9 = vpop.permute.xlu1 %180 }
  0xc6   :  { %v139_v24 = vpop.f32.mrf.mxu0 }
  0xc7   :  { %v140_v43 = vadd.f32 %v139_v24, %v36_v40 }
  0xc8   :  { %v141_v25 = vpop.f32.mrf.mxu0 }
  0xc9   :  { %v142_v42 = vadd.f32 %v141_v25, %v36_v40 }
  0xca   :  { %v145_v26 = vpop.f32.mrf.mxu0 }
  0xcb   :  { %v146_v41 = vadd.f32 %v145_v26, %v41_v31 }
  0xcc   :  { %v147_v27 = vpop.f32.mrf.mxu0 }
  0xcd   :  { %v148_v39 = vadd.f32 %v147_v27, %v41_v31  ;;  %v723_v31 = vld [vmem:[%s1107_s3 + $0x30] sm:$0xff] }
  0xce   :  { %v151_v29 = vpop.f32.mrf.mxu0 }
  0xcf   :  { %v152_v38 = vadd.f32 %v151_v29, %v46_v33  ;;  %v721_v29 = vld [vmem:[%s1107_s3 + $0x20] sm:$0xff] }
  0xd0   :  { %v153_v30 = vpop.f32.mrf.mxu0 }
  0xd1   :  { %v154_v36 = vadd.f32 %v153_v30, %v46_v33  ;;  %v722_v30 = vld [vmem:[%s1107_s3 + $0x28] sm:$0xff] }
  0xd2   :  { %v157_v32 = vpop.f32.mrf.mxu0 }
  0xd3   :  { %v158_v34 = vadd.f32 %v157_v32, %v51_v28  ;;  %v724_v32 = vld [vmem:[%s1107_s3 + $0x38] sm:$0xff] }
  0xd4   :  { %v159_v35 = vpop.f32.mrf.mxu0 }
  0xd5   :  { %v160_v37 = vadd.f32 %v159_v35, %v51_v28 }
  0xd7   :  { %753 = vtanh.f32 %v160_v37  ;;  %v344_v37 = vpop.permute.xlu0 %343 }
  0xd8   :  { %755 = vtanh.f32 %v158_v34 }
  0xd9   :  { %757 = vtanh.f32 %v154_v36 }
  0xda   :  { %759 = vtanh.f32 %v152_v38 }
  0xdb   :  { %761 = vtanh.f32 %v148_v39  ;;  %v339_v39 = vpop.permute.xlu1 %338 }
  0xdc   :  { %763 = vtanh.f32 %v146_v41 }
  0xdd   :  { %765 = vtanh.f32 %v142_v42 }
  0xde   :  { %767 = vtanh.f32 %v140_v43 }
  0xe4   :  { %v754_v44 = vpop.eup %753 }
  0xe5   :  { %v756_v45 = vpop.eup %755  ;;  %235 = vmatprep.subr.mxu1 %v754_v44 }
  0xe6   :  { %v950_v46 = vpop.eup %757  ;;  %236 = vmatpush1.msra.mxu1 %v756_v45 }
  0xe7   :  { %v952_v47 = vpop.eup %759  ;;  %237 = vmatprep.subr.mxu1 %v950_v46 }
  0xe8   :  { %v955_v48 = vpop.eup %761  ;;  %238 = vmatpush1.msra.mxu1 %v952_v47 }
  0xe9   :  { %v958_v49 = vpop.eup %763  ;;  %239 = vmatprep.subr.mxu1 %v955_v48 }
  0xea   :  { %v961_v50 = vpop.eup %765  ;;  %240 = vmatpush1.msra.mxu1 %v958_v49 }
  0xeb   :  { %v967_v52 = vpop.eup %767  ;;  %241 = vmatprep.subr.mxu1 %v961_v50 }
  0xec   :  { %242 = vmatpush1.msra.mxu1 %v967_v52 }
  0xed   :  { %717 = vmatmul.mubr.msk.f32.vlgmr.msra.gmra.mxu1 %vm198_vm2, %v170_v51 }
  0xee   :  { %281 = vmatprep.mubr.f32.mxu1 %v839_v2 }
  0xf1   :  { %718 = vmatmul.mubr.msk.f32.gmra.mxu1 %vm198_vm2, %v171_v53 }
  0xf2   :  { %287 = vmatprep.mubr.f32.mxu1 %v839_v2 }
  0xf5   :  { %719 = vmatmul.mubr.msk.f32.gmra.mxu1 %vm198_vm2, %v172_v54 }
  0xf6   :  { %293 = vmatprep.mubr.f32.mxu1 %v839_v2 }
  0xf9   :  { %720 = vmatmul.mubr.msk.f32.gmra.mxu1 %vm198_vm2, %v173_v55 }
  0xfa   :  { %569 = vmatprep.mubr.f32.mxu1 %v839_v2 }
 0x1ad   :  { %v277_v56 = vpop.f32.mrf.mxu1 }
 0x1ae   :  { %v278_v12 = vadd.f32 %v277_v56, %v181_v9 }
 0x1af   :  { %v279_v57 = vpop.f32.mrf.mxu1 }
 0x1b0   :  { %v280_v11 = vadd.f32 %v279_v57, %v181_v9  ;;  %v736_v9 = vld [vmem:[%s1107_s3 + $0x58] sm:$0xff] }
 0x1b1   :  { %v283_v58 = vpop.f32.mrf.mxu1 }
 0x1b2   :  { %v284_v10 = vadd.f32 %v283_v58, %v186_v4 }
 0x1b3   :  { %v285_v59 = vpop.f32.mrf.mxu1 }
 0x1b4   :  { %v286_v7 = vadd.f32 %v285_v59, %v186_v4 }
 0x1b5   :  { %v289_v61 = vpop.f32.mrf.mxu1 }
 0x1b6   :  { %v290_v5 = vadd.f32 %v289_v61, %v191_v62 }
 0x1b7   :  { %v291_v63 = vpop.f32.mrf.mxu1 }
 0x1b8   :  { %v292_v0 = vadd.f32 %v291_v63, %v191_v62 }
 0x1b9   :  { %v295_v1 = vpop.f32.mrf.mxu1 }
 0x1ba   :  { %v296_v3 = vadd.f32 %v295_v1, %v196_v60  ;;  %769 = vtanh.f32 %v292_v0 }
 0x1bb   :  { %v297_v6 = vpop.f32.mrf.mxu1 }
 0x1bc   :  { %v298_v8 = vadd.f32 %v297_v6, %v196_v60  ;;  %771 = vtanh.f32 %v296_v3  ;;  %v733_v6 = vld [vmem:[%s1107_s3 + $0x40] sm:$0xff] }
 0x1be   :  { %773 = vtanh.f32 %v298_v8  ;;  %v735_v8 = vld [vmem:[%s1107_s3 + $0x50] sm:$0xff] }
 0x1bf   :  { %775 = vtanh.f32 %v290_v5 }
 0x1c0   :  { %777 = vtanh.f32 %v286_v7  ;;  %v734_v7 = vld [vmem:[%s1107_s3 + $0x48] sm:$0xff] }
 0x1c1   :  { %779 = vtanh.f32 %v284_v10 }
 0x1c2   :  { %781 = vtanh.f32 %v280_v11 }
 0x1c3   :  { %783 = vtanh.f32 %v278_v12 }
 0x1c7   :  { %v770_v13 = vpop.eup %769 }
 0x1c8   :  { %v994_v21 = vadd.f32 %v770_v13, %v950_v46 }
 0x1c9   :  { %v772_v14 = vpop.eup %771 }
 0x1ca   :  { %v990_v19 = vadd.f32 %v772_v14, %v756_v45 }
 0x1cb   :  { %v774_v15 = vpop.eup %773 }
 0x1cc   :  { %v776_v16 = vpop.eup %775  ;;  %v988_v17 = vadd.f32 %v774_v15, %v754_v44  ;;  %v334_v44 = vpop.permute.xlu0 %333 }
 0x1cd   :  { %v778_v18 = vpop.eup %777  ;;  %v998_v23 = vadd.f32 %v776_v16, %v952_v47 }
 0x1ce   :  { %v780_v20 = vpop.eup %779  ;;  %382 = vmatprep.subr.mxu0 %v988_v17  ;;  %v1002_v25 = vadd.f32 %v778_v18, %v955_v48 }
 0x1cf   :  { %v782_v22 = vpop.eup %781  ;;  %383 = vmatpush1.msra.mxu0 %v990_v19  ;;  %v1006_v26 = vadd.f32 %v780_v20, %v958_v49  ;;  %v329_v49 = vpop.permute.xlu1 %328 }
 0x1d0   :  { %v784_v24 = vpop.eup %783  ;;  %384 = vmatprep.subr.mxu0 %v994_v21  ;;  %v1010_v27 = vadd.f32 %v782_v22, %v961_v50  ;;  %v491_v14 = vpop.permute.xlu0 %490 }
 0x1d1   :  { %385 = vmatpush1.msra.mxu0 %v998_v23  ;;  %v1014_v28 = vadd.f32 %v784_v24, %v967_v52 }
 0x1d2   :  { %386 = vmatprep.subr.mxu0 %v1002_v25 }
 0x1d3   :  { %387 = vmatpush1.msra.mxu0 %v1006_v26  ;;  %v486_v16 = vpop.permute.xlu1 %485 }
 0x1d4   :  { %388 = vmatprep.subr.mxu0 %v1010_v27 }
 0x1d5   :  { %389 = vmatpush1.msra.mxu0 %v1014_v28 }
 0x1d6   :  { %729 = vmatmul.mubr.msk.f32.vlgmr.msra.gmra.mxu0 %vm198_vm2, %v721_v29 }
 0x1d7   :  { %428 = vmatprep.mubr.f32.mxu0 %v839_v2 }
 0x1da   :  { %730 = vmatmul.mubr.msk.f32.gmra.mxu0 %vm198_vm2, %v722_v30 }
 0x1db   :  { %434 = vmatprep.mubr.f32.mxu0 %v839_v2 }
 0x1de   :  { %731 = vmatmul.mubr.msk.f32.gmra.mxu0 %vm198_vm2, %v723_v31 }
 0x1df   :  { %440 = vmatprep.mubr.f32.mxu0 %v839_v2 }
 0x1e2   :  { %732 = vmatmul.mubr.msk.f32.gmra.mxu0 %vm198_vm2, %v724_v32 }
 0x1e3   :  { %678 = vmatprep.mubr.f32.mxu0 %v839_v2 }
 0x296   :  { %v424_v33 = vpop.f32.mrf.mxu0 }
 0x297   :  { %v425_v52 = vadd.f32 %v424_v33, %v329_v49 }
 0x298   :  { %v426_v34 = vpop.f32.mrf.mxu0 }
 0x299   :  { %v427_v51 = vadd.f32 %v426_v34, %v329_v49 }
 0x29a   :  { %v430_v35 = vpop.f32.mrf.mxu0 }
 0x29b   :  { %v431_v50 = vadd.f32 %v430_v35, %v334_v44 }
 0x29c   :  { %v432_v36 = vpop.f32.mrf.mxu0 }
 0x29d   :  { %v433_v47 = vadd.f32 %v432_v36, %v334_v44 }
 0x29e   :  { %v436_v38 = vpop.f32.mrf.mxu0 }
 0x29f   :  { %v437_v45 = vadd.f32 %v436_v38, %v339_v39 }
 0x2a0   :  { %v438_v40 = vpop.f32.mrf.mxu0 }
 0x2a1   :  { %v439_v41 = vadd.f32 %v438_v40, %v339_v39 }
 0x2a2   :  { %v442_v42 = vpop.f32.mrf.mxu0 }
 0x2a3   :  { %v443_v43 = vadd.f32 %v442_v42, %v344_v37  ;;  %785 = vtanh.f32 %v439_v41 }
 0x2a4   :  { %v444_v46 = vpop.f32.mrf.mxu0 }
 0x2a5   :  { %v445_v48 = vadd.f32 %v444_v46, %v344_v37  ;;  %787 = vtanh.f32 %v443_v43 }
 0x2a7   :  { %789 = vtanh.f32 %v445_v48 }
 0x2a8   :  { %791 = vtanh.f32 %v437_v45  ;;  %v610_v45 = vld [vmem:[%s1109_s5] sm:$0x3] }
 0x2a9   :  { %793 = vtanh.f32 %v433_v47 }
 0x2aa   :  { %795 = vtanh.f32 %v431_v50 }
 0x2ab   :  { %797 = vtanh.f32 %v427_v51 }
 0x2ac   :  { %799 = vtanh.f32 %v425_v52 }
 0x2b0   :  { %v786_v53 = vpop.eup %785 }
 0x2b1   :  { %v1046_v61 = vadd.f32 %v786_v53, %v994_v21  ;;  %v481_v21 = vpop.permute.xlu0 %480 }
 0x2b2   :  { %v788_v54 = vpop.eup %787 }
 0x2b3   :  { %v1042_v59 = vadd.f32 %v788_v54, %v990_v19 }
 0x2b4   :  { %v790_v55 = vpop.eup %789 }
 0x2b5   :  { %v792_v56 = vpop.eup %791  ;;  %v1039_v57 = vadd.f32 %v790_v55, %v988_v17 }
 0x2b6   :  { %v794_v58 = vpop.eup %793  ;;  %v1050_v63 = vadd.f32 %v792_v56, %v998_v23 }
 0x2b7   :  { %v796_v60 = vpop.eup %795  ;;  %529 = vmatprep.subr.mxu1 %v1039_v57  ;;  %v1054_v1 = vadd.f32 %v794_v58, %v1002_v25  ;;  %v476_v25 = vpop.permute.xlu1 %475 }
 0x2b8   :  { %v798_v62 = vpop.eup %797  ;;  %530 = vmatpush1.msra.mxu1 %v1042_v59  ;;  %v1058_v3 = vadd.f32 %v796_v60, %v1006_v26 }
 0x2b9   :  { %v800_v0 = vpop.eup %799  ;;  %531 = vmatprep.subr.mxu1 %v1046_v61  ;;  %v1062_v4 = vadd.f32 %v798_v62, %v1010_v27 }
 0x2ba   :  { %532 = vmatpush1.msra.mxu1 %v1050_v63  ;;  %v1066_v5 = vadd.f32 %v800_v0, %v1014_v28 }
 0x2bb   :  { %533 = vmatprep.subr.mxu1 %v1054_v1 }
 0x2bc   :  { %534 = vmatpush1.msra.mxu1 %v1058_v3 }
 0x2bd   :  { %535 = vmatprep.subr.mxu1 %v1062_v4 }
 0x2be   :  { %536 = vmatpush1.msra.mxu1 %v1066_v5 }
 0x2bf   :  { %741 = vmatmul.mubr.msk.f32.vlgmr.msra.gmra.mxu1 %vm198_vm2, %v733_v6 }
 0x2c0   :  { %575 = vmatprep.mubr.f32.mxu1 %v839_v2 }
 0x2c3   :  { %742 = vmatmul.mubr.msk.f32.gmra.mxu1 %vm198_vm2, %v734_v7 }
 0x2c4   :  { %581 = vmatprep.mubr.f32.mxu1 %v839_v2 }
 0x2c7   :  { %743 = vmatmul.mubr.msk.f32.gmra.mxu1 %vm198_vm2, %v735_v8 }
 0x2c8   :  { %587 = vmatprep.mubr.f32.mxu1 %v839_v2 }
 0x2cb   :  { %744 = vmatmul.mubr.msk.f32.gmra.mxu1 %vm198_vm2, %v736_v9 }
 0x37f   :  { %v571_v10 = vpop.f32.mrf.mxu1 }
 0x380   :  { %v572_v28 = vadd.f32 %v571_v10, %v476_v25 }
 0x381   :  { %v573_v11 = vpop.f32.mrf.mxu1 }
 0x382   :  { %v574_v27 = vadd.f32 %v573_v11, %v476_v25 }
 0x383   :  { %v577_v12 = vpop.f32.mrf.mxu1 }
 0x384   :  { %v578_v26 = vadd.f32 %v577_v12, %v481_v21 }
 0x385   :  { %v579_v13 = vpop.f32.mrf.mxu1 }
 0x386   :  { %v580_v23 = vadd.f32 %v579_v13, %v481_v21 }
 0x387   :  { %v583_v15 = vpop.f32.mrf.mxu1 }
 0x388   :  { %v584_v22 = vadd.f32 %v583_v15, %v486_v16 }
 0x389   :  { %v585_v17 = vpop.f32.mrf.mxu1 }
 0x38a   :  { %v586_v18 = vadd.f32 %v585_v17, %v486_v16 }
 0x38b   :  { %v589_v19 = vpop.f32.mrf.mxu1 }
 0x38c   :  { %v590_v20 = vadd.f32 %v589_v19, %v491_v14  ;;  %801 = vtanh.f32 %v586_v18 }
 0x38d   :  { %v591_v2 = vpop.f32.mrf.mxu1 }
 0x38e   :  { %v592_v24 = vadd.f32 %v591_v2, %v491_v14  ;;  %803 = vtanh.f32 %v590_v20 }
 0x390   :  { %805 = vtanh.f32 %v592_v24 }
 0x391   :  { %807 = vtanh.f32 %v584_v22 }
 0x392   :  { %809 = vtanh.f32 %v580_v23 }
 0x393   :  { %811 = vtanh.f32 %v578_v26 }
 0x394   :  { %813 = vtanh.f32 %v574_v27 }
 0x395   :  { %815 = vtanh.f32 %v572_v28 }
 0x399   :  { %v802_v29 = vpop.eup %801 }
 0x39a   :  { %v607_v37 = vadd.f32 %v802_v29, %v1046_v61 }
 0x39b   :  { %v804_v30 = vpop.eup %803 }
 0x39c   :  { %v608_v35 = vadd.f32 %v804_v30, %v1042_v59 }
 0x39d   :  { %v806_v31 = vpop.eup %805 }
 0x39e   :  { %v808_v32 = vpop.eup %807  ;;  %v609_v33 = vadd.f32 %v806_v31, %v1039_v57 }
 0x39f   :  { %v810_v34 = vpop.eup %809  ;;  %v606_v39 = vadd.f32 %v808_v32, %v1050_v63 }
 0x3a0   :  { %v812_v36 = vpop.eup %811  ;;  %638 = vmatprep.subr.mxu0 %v609_v33  ;;  %v605_v41 = vadd.f32 %v810_v34, %v1054_v1 }
 0x3a1   :  { %v814_v38 = vpop.eup %813  ;;  %639 = vmatpush1.msra.mxu0 %v608_v35  ;;  %v604_v42 = vadd.f32 %v812_v36, %v1058_v3 }
 0x3a2   :  { %v816_v40 = vpop.eup %815  ;;  %640 = vmatprep.subr.mxu0 %v607_v37  ;;  %v603_v43 = vadd.f32 %v814_v38, %v1062_v4 }
 0x3a3   :  { %641 = vmatpush1.msra.mxu0 %v606_v39  ;;  %v602_v44 = vadd.f32 %v816_v40, %v1066_v5 }
 0x3a4   :  { %642 = vmatprep.subr.mxu0 %v605_v41 }
 0x3a5   :  { %643 = vmatpush1.msra.mxu0 %v604_v42 }
 0x3a6   :  { %644 = vmatprep.subr.mxu0 %v603_v43 }
 0x3a7   :  { %645 = vmatpush1.msra.mxu0 %v602_v44 }
 0x3a8   :  { %745 = vmatmul.mubr.msk.f32.vlgmr.msra.gmra.mxu0 %vm198_vm2, %v610_v45 }
 0x468   :  { %v680_v46 = vpop.f32.mrf.mxu0 }
 0x46a   :  { %v682_v47 = vpop.f32.mrf.mxu0 }
 0x46b   :  { %v687_v48 = vcombine.low %v680_v46, %v682_v47 }
 0x46d   :  { %746 = vst.sshfl [vmem:[#allocation2] sm:$0x33 pattern:$0x76325410] %v687_v48 }
 0x46e   :  { %828 = shalt.err (!%p825_p4)
}
 0x46f   :  { %706 = dma.vmem_to_hbm [thread:$0]  %s704_s9, 64, %s1110_s6, [#allocation3]  }
 0x470   :  { %837 = dma.done.wait [#allocation3], 64  }
 0x471   :  { %838 = vsyncadd [#allocation3], 4294967232 }
 0x472   :  { %710 = vsyncpa [#allocation3], 1 }

</bundles_post_ra>
